<compile_context>
chip_gen: v7x
topology: tpu7x:2x2x1
jax: 0.10.0
libtpu: 0.0.40
codegen_flags: <defaults>
</compile_context>

<pallas_src>
import functools

import jax
import jax.numpy as jnp
from jax.experimental import pallas as pl
from jax.experimental.pallas import tpu as pltpu

_LANE = 128      # lane width: last dim of every block is padded to this
_SUBLANE = 8     # f32 sublane: batch tile is a multiple of this


def _round_up(x, m):
    return ((x + m - 1) // m) * m


def _fused_mlp_kernel(x_ref, *refs, num_layers, matmul_dtype):
    """refs = (w_0..w_{L-1}, b_0..b_{L-1}, o_ref).

    Computes h = relu(...relu(relu(x@W0+b0)@W1+b1)...) for one batch tile.
    Matmul inputs may be cast to `matmul_dtype` (e.g. bf16); accumulation,
    bias add and ReLU are always f32 (VPU), matmuls run on the MXU.
    """
    w_refs = refs[:num_layers]
    b_refs = refs[num_layers:2 * num_layers]
    o_ref = refs[2 * num_layers]

    h = x_ref[...].astype(jnp.float32)
    for l in range(num_layers):
        lhs = h.astype(matmul_dtype)
        rhs = w_refs[l][...].astype(matmul_dtype)
        y = jnp.dot(lhs, rhs, preferred_element_type=jnp.float32)   # MXU
        h = jnp.maximum(y + b_refs[l][...], 0.0)                    # f32 bias + ReLU (VPU)
    o_ref[...] = h.astype(o_ref.dtype)


@functools.partial(jax.jit, static_argnames=("matmul_dtype", "max_batch_tile"))
def _dnn_forward_pallas_2d(x, params, matmul_dtype, max_batch_tile):
    """Fused DNN forward pass on a 2D input: single pallas_call over a tiled
    batch grid.  x: (B, in_dim) f32.  params: list of (W:(in,out), b:(out,))."""
    B, in_dim = x.shape
    num_layers = len(params)
    assert num_layers >= 1, "hidden_units is empty!!"
    dims = [in_dim] + [w.shape[1] for (w, _) in params]
    dims_pad = [_round_up(d, _LANE) for d in dims]

    # ---- batch tiling: multiple of 8, capped, >=2 grid steps when possible ----
    batch_tile = min(max_batch_tile, _round_up(B, _SUBLANE))
    if B > _SUBLANE and _round_up(B, batch_tile) // batch_tile < 2:
        # split the batch so the parallel grid axis has >=2 steps
        # (pipelining + v7x megacore sharding).
        batch_tile = _round_up(pl.cdiv(B, 2), _SUBLANE)
    B_pad = _round_up(B, batch_tile)
    grid = (B_pad // batch_tile,)

    # ---- zero-pad inputs / params to lane-dense shapes ----
    xp = jnp.zeros((B_pad, dims_pad[0]), x.dtype).at[:B, :in_dim].set(x)
    ws, bs = [], []
    for l, (w, b) in enumerate(params):
        d_in, d_out = dims[l], dims[l + 1]
        assert w.shape == (d_in, d_out)
        wp = jnp.zeros((dims_pad[l], dims_pad[l + 1]), w.dtype).at[:d_in, :d_out].set(w)
        bp = jnp.zeros((1, dims_pad[l + 1]), b.dtype).at[0, :d_out].set(b)
        ws.append(wp)
        bs.append(bp)

    # ---- specs: x/out tiled over batch; weights/biases VMEM-resident ----
    x_spec = pl.BlockSpec((batch_tile, dims_pad[0]), lambda i: (i, 0))
    w_specs = [pl.BlockSpec((dims_pad[l], dims_pad[l + 1]), lambda i: (0, 0))
               for l in range(num_layers)]
    b_specs = [pl.BlockSpec((1, dims_pad[l + 1]), lambda i: (0, 0))
               for l in range(num_layers)]
    out_spec = pl.BlockSpec((batch_tile, dims_pad[-1]), lambda i: (i, 0))

    # ---- VMEM budget hint (double-buffered tiles + resident params) ----
    itemsize = jnp.dtype(x.dtype).itemsize
    param_bytes = (sum(w.size * w.dtype.itemsize for w in ws)
                   + sum(b.size * b.dtype.itemsize for b in bs))
    tile_bytes = (batch_tile * dims_pad[0] + batch_tile * dims_pad[-1]) * itemsize
    act_bytes = batch_tile * max(dims_pad) * 4 * 2
    vmem_needed = 2 * tile_bytes + 2 * param_bytes + act_bytes
    vmem_limit = min(64 * 2**20, max(32 * 2**20, int(1.25 * vmem_needed)))

    # ---- scheduler hint ----
    flops = sum(2 * B_pad * dims_pad[l] * dims_pad[l + 1] for l in range(num_layers))
    bytes_accessed = (xp.size * itemsize + param_bytes
                      + B_pad * dims_pad[-1] * itemsize)
    cost = pl.CostEstimate(flops=flops, transcendentals=0,
                           bytes_accessed=bytes_accessed)

    kernel = functools.partial(_fused_mlp_kernel, num_layers=num_layers,
                               matmul_dtype=matmul_dtype)

    # TODO(synk): K-tiling of the first layer (grid axis over in_dim, marked
    # "arbitrary", with a VMEM accumulator) is not implemented; needed only
    # when inputs_dim is so wide that (batch_tile x in_dim_pad) + W0 exceed
    # the scoped VMEM budget.
    out_pad = pl.pallas_call(
        kernel,
        out_shape=jax.ShapeDtypeStruct((B_pad, dims_pad[-1]), x.dtype),
        grid_spec=pl.GridSpec(
            grid=grid,
            in_specs=[x_spec] + w_specs + b_specs,
            out_specs=out_spec,
        ),
        compiler_params=pltpu.CompilerParams(
            dimension_semantics=("parallel",),
            vmem_limit_bytes=vmem_limit,
        ),
        cost_estimate=cost,
    )(xp, *ws, *bs)

    return out_pad[:B, :dims[-1]]


def dnn_forward(x, params, *, matmul_dtype=jnp.float32, max_batch_tile=256):
    """DNN forward: fused (Linear + ReLU) stack in one Pallas kernel.

    Accepts nD input (..., inputs_dim) like the PyTorch module; leading dims
    are flattened into the batch axis and restored on output.
    dropout_rate=0 and use_bn=False => dropout / BN are identity (eval)."""
    # TODO(synk): dropout_rate>0 / use_bn=True paths not implemented (defaults are off).
    lead = x.shape[:-1]
    x2d = x.reshape((-1, x.shape[-1]))
    out2d = _dnn_forward_pallas_2d(x2d, params, matmul_dtype, max_batch_tile)
    return out2d.reshape(lead + (out2d.shape[-1],))


def init_dnn_params(key, inputs_dim, hidden_units, init_std=1e-4):
    """Matches DNN.__init__: weights ~ Normal(0, init_std); biases use PyTorch
    Linear's default uniform(-1/sqrt(fan_in), 1/sqrt(fan_in)).
    Weights are stored as (in_dim, out_dim) == PyTorch (out, in) transposed."""
    dims = [inputs_dim] + list(hidden_units)
    params = []
    for i in range(len(dims) - 1):
        key, kw, kb = jax.random.split(key, 3)
        fan_in, fan_out = dims[i], dims[i + 1]
        w = init_std * jax.random.normal(kw, (fan_in, fan_out), dtype=jnp.float32)
        bound = 1.0 / jnp.sqrt(jnp.float32(fan_in))
        b = jax.random.uniform(kb, (fan_out,), dtype=jnp.float32,
                               minval=-bound, maxval=bound)
        params.append((w, b))
    return params


if __name__ == "__main__":
    key = jax.random.PRNGKey(0)
    k_in, k_params = jax.random.split(key)

    batch = 64                 # splits into 2 batch tiles -> grid (2,), pipelined
    inputs_dim = 32
    hidden_units = (64, 32, 16)

    x = jax.random.normal(k_in, (batch, inputs_dim), dtype=jnp.float32)
    params = init_dnn_params(k_params, inputs_dim, hidden_units)

    out = dnn_forward(x, params)
    out = jax.block_until_ready(out)

    # Plain-JAX reference of the same forward pass.
    ref = x
    for (w, b) in params:
        ref = jnp.maximum(ref @ w + b, 0.0)

    assert out.shape == (batch, hidden_units[-1])
    assert jnp.allclose(out, ref, atol=1e-5, rtol=1e-5)

    print("KERNEL_OK")
</pallas_src>

<mosaic_0001>
module attributes {stable_mosaic.version = 11 : i64} {
  func.func @_fused_mlp_kernel(%arg0: i32, %arg1: memref<32x128xf32, #tpu.memory_space<vmem>>, %arg2: memref<128x128xf32, #tpu.memory_space<vmem>>, %arg3: memref<128x128xf32, #tpu.memory_space<vmem>>, %arg4: memref<128x128xf32, #tpu.memory_space<vmem>>, %arg5: memref<1x128xf32, #tpu.memory_space<vmem>>, %arg6: memref<1x128xf32, #tpu.memory_space<vmem>>, %arg7: memref<1x128xf32, #tpu.memory_space<vmem>>, %arg8: memref<32x128xf32, #tpu.memory_space<vmem>>) attributes {dimension_semantics = [#tpu.dimension_semantics<parallel>], iteration_bounds = array<i64: 2>, scalar_prefetch = 0 : i64, scratch_operands = 0 : i64, tpu.core_type = #tpu.core_type<tc>, window_params = [{transform_indices = @transform_0, window_bounds = array<i64: 32, 128>}, {pipeline_mode = #tpu.pipeline_mode<synchronous>, transform_indices = @transform_1, window_bounds = array<i64: 128, 128>}, {pipeline_mode = #tpu.pipeline_mode<synchronous>, transform_indices = @transform_2, window_bounds = array<i64: 128, 128>}, {pipeline_mode = #tpu.pipeline_mode<synchronous>, transform_indices = @transform_3, window_bounds = array<i64: 128, 128>}, {pipeline_mode = #tpu.pipeline_mode<synchronous>, transform_indices = @transform_4, window_bounds = array<i64: 1, 128>}, {pipeline_mode = #tpu.pipeline_mode<synchronous>, transform_indices = @transform_5, window_bounds = array<i64: 1, 128>}, {pipeline_mode = #tpu.pipeline_mode<synchronous>, transform_indices = @transform_6, window_bounds = array<i64: 1, 128>}, {transform_indices = @transform_7, window_bounds = array<i64: 32, 128>}]} {
    %c0 = arith.constant 0 : index
    %c0_0 = arith.constant 0 : index
    %0 = vector.load %arg1[%c0, %c0_0] : memref<32x128xf32, #tpu.memory_space<vmem>>, vector<32x128xf32>
    %c0_1 = arith.constant 0 : index
    %c0_2 = arith.constant 0 : index
    %1 = vector.load %arg2[%c0_1, %c0_2] : memref<128x128xf32, #tpu.memory_space<vmem>>, vector<128x128xf32>
    %cst = arith.constant dense<0.000000e+00> : vector<32x128xf32>
    %2 = tpu.matmul %0, %1, %cst {dimension_numbers = #tpu.dot_dimension_numbers<[1], [0], [0], [1], [0, 0, 1, 1], [], []>} : vector<32x128xf32>, vector<128x128xf32>, vector<32x128xf32> -> vector<32x128xf32>
    %c0_3 = arith.constant 0 : index
    %c0_4 = arith.constant 0 : index
    %3 = vector.load %arg5[%c0_3, %c0_4] : memref<1x128xf32, #tpu.memory_space<vmem>>, vector<1x128xf32>
    %4 = vector.broadcast %3 : vector<1x128xf32> to vector<32x128xf32>
    %5 = arith.addf %2, %4 : vector<32x128xf32>
    %cst_5 = arith.constant 0.000000e+00 : f32
    %6 = vector.broadcast %cst_5 : f32 to vector<32x128xf32>
    %7 = arith.maximumf %5, %6 : vector<32x128xf32>
    %c0_6 = arith.constant 0 : index
    %c0_7 = arith.constant 0 : index
    %8 = vector.load %arg3[%c0_6, %c0_7] : memref<128x128xf32, #tpu.memory_space<vmem>>, vector<128x128xf32>
    %cst_8 = arith.constant dense<0.000000e+00> : vector<32x128xf32>
    %9 = tpu.matmul %7, %8, %cst_8 {dimension_numbers = #tpu.dot_dimension_numbers<[1], [0], [0], [1], [0, 0, 1, 1], [], []>} : vector<32x128xf32>, vector<128x128xf32>, vector<32x128xf32> -> vector<32x128xf32>
    %c0_9 = arith.constant 0 : index
    %c0_10 = arith.constant 0 : index
    %10 = vector.load %arg6[%c0_9, %c0_10] : memref<1x128xf32, #tpu.memory_space<vmem>>, vector<1x128xf32>
    %11 = vector.broadcast %10 : vector<1x128xf32> to vector<32x128xf32>
    %12 = arith.addf %9, %11 : vector<32x128xf32>
    %cst_11 = arith.constant 0.000000e+00 : f32
    %13 = vector.broadcast %cst_11 : f32 to vector<32x128xf32>
    %14 = arith.maximumf %12, %13 : vector<32x128xf32>
    %c0_12 = arith.constant 0 : index
    %c0_13 = arith.constant 0 : index
    %15 = vector.load %arg4[%c0_12, %c0_13] : memref<128x128xf32, #tpu.memory_space<vmem>>, vector<128x128xf32>
    %cst_14 = arith.constant dense<0.000000e+00> : vector<32x128xf32>
    %16 = tpu.matmul %14, %15, %cst_14 {dimension_numbers = #tpu.dot_dimension_numbers<[1], [0], [0], [1], [0, 0, 1, 1], [], []>} : vector<32x128xf32>, vector<128x128xf32>, vector<32x128xf32> -> vector<32x128xf32>
    %c0_15 = arith.constant 0 : index
    %c0_16 = arith.constant 0 : index
    %17 = vector.load %arg7[%c0_15, %c0_16] : memref<1x128xf32, #tpu.memory_space<vmem>>, vector<1x128xf32>
    %18 = vector.broadcast %17 : vector<1x128xf32> to vector<32x128xf32>
    %19 = arith.addf %16, %18 : vector<32x128xf32>
    %cst_17 = arith.constant 0.000000e+00 : f32
    %20 = vector.broadcast %cst_17 : f32 to vector<32x128xf32>
    %21 = arith.maximumf %19, %20 : vector<32x128xf32>
    %c0_18 = arith.constant 0 : index
    %c0_19 = arith.constant 0 : index
    %22 = vector.load %arg8[%c0_18, %c0_19] : memref<32x128xf32, #tpu.memory_space<vmem>>, vector<32x128xf32>
    tpu.vector_store %arg8[%c0_18, %c0_19], %21 {strides = array<i32>} : memref<32x128xf32, #tpu.memory_space<vmem>>, vector<32x128xf32>,
    return
  }
  func.func @transform_0(%arg0: i32) -> (i32, i32) {
    %c0_i32 = arith.constant 0 : i32
    %c0_i32_0 = arith.constant 0 : i32
    return %arg0, %c0_i32 : i32, i32
  }
  func.func @transform_1(%arg0: i32) -> (i32, i32) {
    %c0_i32 = arith.constant 0 : i32
    %c0_i32_0 = arith.constant 0 : i32
    %c0_i32_1 = arith.constant 0 : i32
    return %c0_i32, %c0_i32_0 : i32, i32
  }
  func.func @transform_2(%arg0: i32) -> (i32, i32) {
    %c0_i32 = arith.constant 0 : i32
    %c0_i32_0 = arith.constant 0 : i32
    %c0_i32_1 = arith.constant 0 : i32
    return %c0_i32, %c0_i32_0 : i32, i32
  }
  func.func @transform_3(%arg0: i32) -> (i32, i32) {
    %c0_i32 = arith.constant 0 : i32
    %c0_i32_0 = arith.constant 0 : i32
    %c0_i32_1 = arith.constant 0 : i32
    return %c0_i32, %c0_i32_0 : i32, i32
  }
  func.func @transform_4(%arg0: i32) -> (i32, i32) {
    %c0_i32 = arith.constant 0 : i32
    %c0_i32_0 = arith.constant 0 : i32
    %c0_i32_1 = arith.constant 0 : i32
    return %c0_i32, %c0_i32_0 : i32, i32
  }
  func.func @transform_5(%arg0: i32) -> (i32, i32) {
    %c0_i32 = arith.constant 0 : i32
    %c0_i32_0 = arith.constant 0 : i32
    %c0_i32_1 = arith.constant 0 : i32
    return %c0_i32, %c0_i32_0 : i32, i32
  }
  func.func @transform_6(%arg0: i32) -> (i32, i32) {
    %c0_i32 = arith.constant 0 : i32
    %c0_i32_0 = arith.constant 0 : i32
    %c0_i32_1 = arith.constant 0 : i32
    return %c0_i32, %c0_i32_0 : i32, i32
  }
  func.func @transform_7(%arg0: i32) -> (i32, i32) {
    %c0_i32 = arith.constant 0 : i32
    %c0_i32_0 = arith.constant 0 : i32
    return %arg0, %c0_i32 : i32, i32
  }
}

</mosaic_0001>

<bundles_post_ra>
// kernel: _dnn_forward_pallas_2d.1
= control target key start
LH: loop header
LB: loop body
LE: loop exit
PB: predicated region body
PF: predicated region fallthrough
CT: control target
= control target key end

     0   :  { %s1038_s24 = smov 0   ;;  %s1221_s0 = inlined_call_operand.vmem [shape: f32[64,128], index: 0, kind: input, shape index: {}]   ;;  %s1222_s1 = inlined_call_operand.vmem [shape: f32[128,128], index: 1, kind: input, shape index: {}]   ;;  %s1223_s2 = inlined_call_operand.vmem [shape: f32[128,128], index: 2, kind: input, shape index: {}]   ;;  %s1224_s3 = inlined_call_operand.vmem [shape: f32[128,128], index: 3, kind: input, shape index: {}]   ;;  %s1225_s4 = inlined_call_operand.vmem [shape: f32[1,128], index: 4, kind: input, shape index: {}]   ;;  %s1226_s5 = inlined_call_operand.vmem [shape: f32[1,128], index: 5, kind: input, shape index: {}]   ;;  %s1227_s6 = inlined_call_operand.vmem [shape: f32[1,128], index: 6, kind: input, shape index: {}]   ;;  %s1228_s7 = inlined_call_operand.vmem [shape: f32[64,128], index: 7, kind: output, shape index: {}]  }
   0x1 LB: > { %s682_s25 = sadd.s32 4294967295, %s996_s24   ;;  %p686_p0 = scmp.ge.s32.totalorder %s996_s24, 1  ;;  %s996_s24 = sphi %s1038_s24, %s17_s24  }
   0x2   : > { %p238_p1 = scmp.lt.s32.totalorder %s996_s24, 3 }
   0x4   : > { %p239_p2 = pnand %p686_p0, %p238_p1 }
   0x5   : > { %v286_v0 = vld [vmem:[%s1222_s1] sm:$0xff] (!%p239_p2)  ;;  %v287_v1 = vld [vmem:[%s1222_s1 + $0x8] sm:$0xff] (!%p239_p2)  ;;  %v288_v2 = vld [vmem:[%s1222_s1 + $0x10] sm:$0xff] (!%p239_p2)  ;;  %s687_s9 = sshll.u32 (!%p239_p2), %s682_s25, 2 }
   0x6   : > { %242 = sbr.rel (%p239_p2) target bundleno = 698 (0x2ba), region = 48  ;;  %v870_v3 = vpack.c.bf16 (!%p239_p2), %v287_v1, %v286_v0  ;;  %v289_v4 = vld [vmem:[%s1222_s1 + $0x18] sm:$0xff] (!%p239_p2)  ;;  %p271_p3 = scmp.lt.s32.totalorder (!%p239_p2), %s687_s9, 7  ;;  %v290_v6 = vld [vmem:[%s1222_s1 + $0x20] sm:$0xff] (!%p239_p2)  ;;  %v291_v7 = vld [vmem:[%s1222_s1 + $0x28] sm:$0xff] (!%p239_p2) }
   0x7   : > { %v874_v5 = vpack.c.bf16 (!%p239_p2), %v289_v4, %v288_v2  ;;  %v878_v8 = vpack.c.bf16 (!%p239_p2), %v291_v7, %v290_v6  ;;  %v292_v9 = vld [vmem:[%s1222_s1 + $0x30] sm:$0xff] (!%p239_p2)  ;;  %v398_v10 = vld [vmem:[%s1223_s2] sm:$0xff] (!%p239_p2)  ;;  %v399_v11 = vld [vmem:[%s1223_s2 + $0x8] sm:$0xff] (!%p239_p2) }
   0x8   : > { %871 = vmatprep.subr.bf16.mxu0 (!%p239_p2), %v870_v3  ;;  %v293_v12 = vld [vmem:[%s1222_s1 + $0x38] sm:$0xff] (!%p239_p2)  ;;  %v902_v13 = vpack.c.bf16 (!%p239_p2), %v399_v11, %v398_v10  ;;  %v400_v14 = vld [vmem:[%s1223_s2 + $0x10] sm:$0xff] (!%p239_p2)  ;;  %v402_v18 = vld [vmem:[%s1223_s2 + $0x20] sm:$0xff] (!%p239_p2) }
   0x9   : > { %873 = vmatpush3.bf16.msra.mxu0 (!%p239_p2), %v870_v3  ;;  %v401_v15 = vld [vmem:[%s1223_s2 + $0x18] sm:$0xff] (!%p239_p2)  ;;  %v403_v19 = vld [vmem:[%s1223_s2 + $0x28] sm:$0xff] (!%p239_p2)  ;;  %v882_v20 = vpack.c.bf16 (!%p239_p2), %v293_v12, %v292_v9  ;;  %v294_v21 = vld [vmem:[%s1222_s1 + $0x40] sm:$0xff] (!%p239_p2) }
   0xa   : > { %875 = vmatprep.subr.bf16.mxu0 (!%p239_p2), %v874_v5  ;;  %v906_v17 = vpack.c.bf16 (!%p239_p2), %v401_v15, %v400_v14  ;;  %903 = vmatprep.subr.bf16.mxu1 (!%p239_p2), %v902_v13  ;;  %v295_v22 = vld [vmem:[%s1222_s1 + $0x48] sm:$0xff] (!%p239_p2)  ;;  %v910_v23 = vpack.c.bf16 (!%p239_p2), %v403_v19, %v402_v18  ;;  %v404_v24 = vld [vmem:[%s1223_s2 + $0x30] sm:$0xff] (!%p239_p2)  ;;  %v405_v25 = vld [vmem:[%s1223_s2 + $0x38] sm:$0xff] (!%p239_p2) }
   0xb   : > { %905 = vmatpush3.bf16.msra.mxu1 (!%p239_p2), %v902_v13  ;;  %v886_v26 = vpack.c.bf16 (!%p239_p2), %v295_v22, %v294_v21  ;;  %v296_v27 = vld [vmem:[%s1222_s1 + $0x50] sm:$0xff] (!%p239_p2)  ;;  %v297_v28 = vld [vmem:[%s1222_s1 + $0x58] sm:$0xff] (!%p239_p2)  ;;  %v914_v29 = vpack.c.bf16 (!%p239_p2), %v405_v25, %v404_v24  ;;  %v406_v30 = vld [vmem:[%s1223_s2 + $0x40] sm:$0xff] (!%p239_p2) }
   0xc   : > { %907 = vmatprep.subr.bf16.mxu1 (!%p239_p2), %v906_v17  ;;  %v407_v31 = vld [vmem:[%s1223_s2 + $0x48] sm:$0xff] (!%p239_p2)  ;;  %v890_v32 = vpack.c.bf16 (!%p239_p2), %v297_v28, %v296_v27  ;;  %v298_v33 = vld [vmem:[%s1222_s1 + $0x60] sm:$0xff] (!%p239_p2)  ;;  %v408_v36 = vld [vmem:[%s1223_s2 + $0x50] sm:$0xff] (!%p239_p2) }
   0xd   : > { %s1230_s9 = smov (!%p271_p3, %s687_s9), 7  ;;  %877 = vmatpush3.bf16.msra.mxu0 %v874_v5  ;;  %v299_v34 = vld [vmem:[%s1222_s1 + $0x68] sm:$0xff]  ;;  %v918_v35 = vpack.c.bf16 %v407_v31, %v406_v30  ;;  %v409_v37 = vld [vmem:[%s1223_s2 + $0x58] sm:$0xff]  ;;  %v300_v39 = vld [vmem:[%s1222_s1 + $0x70] sm:$0xff] }
   0xe   : > { %s688_s18 = sshll.u32 %s1230_s9, 3  ;;  %879 = vmatprep.subr.bf16.mxu0 %v878_v8  ;;  %v894_v38 = vpack.c.bf16 %v299_v34, %v298_v33  ;;  %v301_v40 = vld [vmem:[%s1222_s1 + $0x78] sm:$0xff]  ;;  %v922_v41 = vpack.c.bf16 %v409_v37, %v408_v36  ;;  %v410_v42 = vld [vmem:[%s1223_s2 + $0x60] sm:$0xff]  ;;  %v411_v43 = vld [vmem:[%s1223_s2 + $0x68] sm:$0xff] }
   0xf   : > { %s1084_s28 = scalar_lea.vmem %s1221_s0, %s688_s18  ;;  %909 = vmatpush3.bf16.msra.mxu1 %v906_v17  ;;  %v898_v44 = vpack.c.bf16 %v301_v40, %v300_v39  ;;  %v926_v45 = vpack.c.bf16 %v411_v43, %v410_v42  ;;  %v412_v49 = vld [vmem:[%s1223_s2 + $0x70] sm:$0xff]  ;;  %v413_v50 = vld [vmem:[%s1223_s2 + $0x78] sm:$0xff]  ;;  %v510_v52 = vld [vmem:[%s1224_s3] sm:$0xff]  ;;  %s280_s13 = scalar_lea.vmem %s1228_s7, %s688_s18 }
  0x10   : > { %v282_v16 = vld [vmem:[%s1084_s28] sm:$0xff]  ;;  %911 = vmatprep.subr.bf16.mxu1 %v910_v23  ;;  %v283_v46 = vld [vmem:[%s1084_s28 + $0x8] sm:$0xff]  ;;  %v284_v47 = vld [vmem:[%s1084_s28 + $0x10] sm:$0xff]  ;;  %v930_v51 = vpack.c.bf16 %v413_v50, %v412_v49 }
  0x11   : > { %788 = vmatprep.mubr.f32.mxu0 %v282_v16  ;;  %881 = vmatpush3.bf16.msra.mxu0 %v878_v8  ;;  %v285_v48 = vld [vmem:[%s1084_s28 + $0x18] sm:$0xff]  ;;  %v511_v53 = vld [vmem:[%s1224_s3 + $0x8] sm:$0xff]  ;;  %v512_v54 = vld [vmem:[%s1224_s3 + $0x10] sm:$0xff] }
  0x12   : > { %883 = vmatprep.subr.bf16.mxu0 %v882_v20  ;;  %v934_v55 = vpack.c.bf16 %v511_v53, %v510_v52  ;;  %v513_v56 = vld [vmem:[%s1224_s3 + $0x18] sm:$0xff]  ;;  %v514_v58 = vld [vmem:[%s1224_s3 + $0x20] sm:$0xff]  ;;  %v515_v59 = vld [vmem:[%s1224_s3 + $0x28] sm:$0xff] }
  0x13   : > { %913 = vmatpush3.bf16.msra.mxu1 %v910_v23  ;;  %v938_v57 = vpack.c.bf16 %v513_v56, %v512_v54  ;;  %v942_v60 = vpack.c.bf16 %v515_v59, %v514_v58  ;;  %v516_v61 = vld [vmem:[%s1224_s3 + $0x30] sm:$0xff]  ;;  %v517_v62 = vld [vmem:[%s1224_s3 + $0x38] sm:$0xff]  ;;  %v518_v0 = vld [vmem:[%s1224_s3 + $0x40] sm:$0xff] }
  0x14   : > { %915 = vmatprep.subr.bf16.mxu1 %v914_v29  ;;  %v946_v63 = vpack.c.bf16 %v517_v62, %v516_v61  ;;  %v519_v1 = vld [vmem:[%s1224_s3 + $0x48] sm:$0xff]  ;;  %v520_v3 = vld [vmem:[%s1224_s3 + $0x50] sm:$0xff]  ;;  %v521_v4 = vld [vmem:[%s1224_s3 + $0x58] sm:$0xff] }
  0x15   : > { %885 = vmatpush3.bf16.msra.mxu0 %v882_v20  ;;  %v950_v2 = vpack.c.bf16 %v519_v1, %v518_v0  ;;  %v954_v5 = vpack.c.bf16 %v521_v4, %v520_v3  ;;  %v522_v6 = vld [vmem:[%s1224_s3 + $0x60] sm:$0xff]  ;;  %v523_v7 = vld [vmem:[%s1224_s3 + $0x68] sm:$0xff]  ;;  %v524_v22 = vld [vmem:[%s1224_s3 + $0x70] sm:$0xff] }
  0x16   : > { %887 = vmatprep.subr.bf16.mxu0 %v886_v26  ;;  %v958_v8 = vpack.c.bf16 %v523_v7, %v522_v6  ;;  %v691_v9 = vld [vmem:[%s1225_s4] ss:$0 sm:$0xff]  ;;  %v525_v23 = vld [vmem:[%s1224_s3 + $0x78] sm:$0xff] }
  0x17   : > { %917 = vmatpush3.bf16.msra.mxu1 %v914_v29  ;;  %v962_v24 = vpack.c.bf16 %v525_v23, %v524_v22  ;;  %v692_v25 = vld [vmem:[%s1226_s5] ss:$0 sm:$0xff] }
  0x18   : > { %919 = vmatprep.subr.bf16.mxu1 %v918_v35 }
  0x19   : > { %889 = vmatpush3.bf16.msra.mxu0 %v886_v26 }
  0x1a   : > { %891 = vmatprep.subr.bf16.mxu0 %v890_v32 }
  0x1b   : > { %921 = vmatpush3.bf16.msra.mxu1 %v918_v35 }
  0x1c   : > { %923 = vmatprep.subr.bf16.mxu1 %v922_v41 }
  0x1d   : > { %893 = vmatpush3.bf16.msra.mxu0 %v890_v32 }
  0x1e   : > { %895 = vmatprep.subr.bf16.mxu0 %v894_v38 }
  0x1f   : > { %925 = vmatpush3.bf16.msra.mxu1 %v922_v41 }
  0x20   : > { %927 = vmatprep.subr.bf16.mxu1 %v926_v45 }
  0x21   : > { %897 = vmatpush3.bf16.msra.mxu0 %v894_v38  ;;  %v693_v38 = vld [vmem:[%s1227_s6] ss:$0 sm:$0xff] }
  0x22   : > { %899 = vmatprep.subr.bf16.mxu0 %v898_v44 }
  0x23   : > { %929 = vmatpush3.bf16.msra.mxu1 %v926_v45 }
  0x24   : > { %931 = vmatprep.subr.bf16.mxu1 %v930_v51 }
  0x25   : > { %901 = vmatpush3.bf16.msra.mxu0 %v898_v44 }
  0x26   : > { %935 = vmatprep.subr.bf16.mxu0 %v934_v55 }
  0x27   : > { %933 = vmatpush3.bf16.msra.mxu1 %v930_v51 }
  0x28   : > { %789 = vmatmul.mubr.f32.vlgmr.msra.gmra.mrb[0].mxu0 %v283_v46  ;;  %966 = vmatprep.subr.bf16.mxu1 %v934_v55 }
  0x29   : > { %791 = vmatprep.mubr.f32.mxu0 %v284_v47  ;;  %937 = vmatpush3.bf16.msra.mxu0 %v934_v55 }
  0x2a   : > { %939 = vmatprep.subr.bf16.mxu0 %v938_v57 }
  0x2c   : > { %792 = vmatmul.mubr.f32.gmra.mrb[2].mxu0 %v285_v48 }
  0x2d   : > { %941 = vmatpush3.bf16.msra.mxu0 %v938_v57 }
  0x2e   : > { %943 = vmatprep.subr.bf16.mxu0 %v942_v60 }
  0x31   : > { %945 = vmatpush3.bf16.msra.mxu0 %v942_v60 }
  0x32   : > { %947 = vmatprep.subr.bf16.mxu0 %v946_v63 }
  0x35   : > { %949 = vmatpush3.bf16.msra.mxu0 %v946_v63 }
  0x36   : > { %951 = vmatprep.subr.bf16.mxu0 %v950_v2 }
  0x39   : > { %953 = vmatpush3.bf16.msra.mxu0 %v950_v2 }
  0x3a   : > { %955 = vmatprep.subr.bf16.mxu0 %v954_v5 }
  0x3d   : > { %957 = vmatpush3.bf16.msra.mxu0 %v954_v5 }
  0x3e   : > { %959 = vmatprep.subr.bf16.mxu0 %v958_v8 }
  0x41   : > { %961 = vmatpush3.bf16.msra.mxu0 %v958_v8 }
  0x42   : > { %963 = vmatprep.subr.bf16.mxu0 %v962_v24 }
  0x45   : > { %965 = vmatpush3.bf16.msra.mxu0 %v962_v24 }
  0xfb   : > { %v790_v10 = vpop.f32.mrb[0].mxu0 }
  0xfc   : > { %v381_v11 = vadd.f32 %v790_v10, %v691_v9  ;;  %v375_v12 = vpop.f32.mrb[1].mxu0 }
  0xfd   : > { %v376_v13 = vadd.f32 %v691_v9, %v375_v12 }
  0xfe   : > { %v395_v16 = vmax.f32 %v381_v11, 0.0 }
  0xff   : > { %v793_v14 = vpop.f32.mrb[2].mxu0  ;;  %v394_v15 = vmax.f32 %v376_v13, 0.0 }
 0x100   : > { %v391_v17 = vadd.f32 %v793_v14, %v691_v9  ;;  %v385_v18 = vpop.f32.mrb[3].mxu0 }
 0x101   : > { %v386_v19 = vadd.f32 %v691_v9, %v385_v18  ;;  %826 = vmatprep.mubr.f32.mxu1 %v394_v15 }
 0x102   : > { %827 = vmatmul.mubr.f32.vlgmr.msra.gmra.mrb[0].mxu1 %v395_v16  ;;  %v397_v21 = vmax.f32 %v391_v17, 0.0 }
 0x103   : > { %v396_v20 = vmax.f32 %v386_v19, 0.0  ;;  %974 = vmatpush3.bf16.msra.mxu1 %v934_v55 }
 0x104   : > { %967 = vmatprep.subr.bf16.mxu1 %v938_v57 }
 0x105   : > { %829 = vmatprep.mubr.f32.mxu1 %v396_v20 }
 0x106   : > { %830 = vmatmul.mubr.f32.gmra.mrb[2].mxu1 %v397_v21 }
 0x107   : > { %975 = vmatpush3.bf16.msra.mxu1 %v938_v57 }
 0x108   : > { %968 = vmatprep.subr.bf16.mxu1 %v942_v60 }
 0x10b   : > { %976 = vmatpush3.bf16.msra.mxu1 %v942_v60 }
 0x10c   : > { %969 = vmatprep.subr.bf16.mxu1 %v946_v63 }
 0x10f   : > { %977 = vmatpush3.bf16.msra.mxu1 %v946_v63 }
 0x110   : > { %970 = vmatprep.subr.bf16.mxu1 %v950_v2 }
 0x113   : > { %978 = vmatpush3.bf16.msra.mxu1 %v950_v2 }
 0x114   : > { %971 = vmatprep.subr.bf16.mxu1 %v954_v5 }
 0x117   : > { %979 = vmatpush3.bf16.msra.mxu1 %v954_v5 }
 0x118   : > { %972 = vmatprep.subr.bf16.mxu1 %v958_v8 }
 0x11b   : > { %980 = vmatpush3.bf16.msra.mxu1 %v958_v8 }
 0x11c   : > { %973 = vmatprep.subr.bf16.mxu1 %v962_v24 }
 0x11f   : > { %981 = vmatpush3.bf16.msra.mxu1 %v962_v24 }
 0x1d5   : > { %v828_v26 = vpop.f32.mrb[0].mxu1 }
 0x1d6   : > { %v493_v27 = vadd.f32 %v828_v26, %v692_v25  ;;  %v487_v28 = vpop.f32.mrb[1].mxu1 }
 0x1d7   : > { %v488_v29 = vadd.f32 %v692_v25, %v487_v28 }
 0x1d8   : > { %v507_v32 = vmax.f32 %v493_v27, 0.0 }
 0x1d9   : > { %v506_v30 = vmax.f32 %v488_v29, 0.0  ;;  %v831_v31 = vpop.f32.mrb[2].mxu1 }
 0x1da   : > { %v503_v33 = vadd.f32 %v831_v31, %v692_v25  ;;  %v497_v34 = vpop.f32.mrb[3].mxu1 }
 0x1db   : > { %v498_v35 = vadd.f32 %v692_v25, %v497_v34  ;;  %864 = vmatprep.mubr.f32.mxu0 %v506_v30 }
 0x1dc   : > { %865 = vmatmul.mubr.f32.vlgmr.msra.gmra.mrb[4].mxu0 %v507_v32  ;;  %v509_v37 = vmax.f32 %v503_v33, 0.0 }
 0x1dd   : > { %v508_v36 = vmax.f32 %v498_v35, 0.0 }
 0x1df   : > { %867 = vmatprep.mubr.f32.mxu1 %v508_v36 }
 0x1e0   : > { %868 = vmatmul.mubr.f32.vlgmr.msra.gmra.mrb[4].mxu1 %v509_v37 }
 0x2af   : > { %v866_v39 = vpop.f32.mrb[4].mxu0 }
 0x2b0   : > { %v605_v40 = vadd.f32 %v866_v39, %v693_v38  ;;  %v599_v41 = vpop.f32.mrb[5].mxu0 }
 0x2b1   : > { %v600_v42 = vadd.f32 %v693_v38, %v599_v41 }
 0x2b2   : > { %v619_v45 = vmax.f32 %v605_v40, 0.0 }
 0x2b3   : > { %v618_v43 = vmax.f32 %v600_v42, 0.0  ;;  %v869_v44 = vpop.f32.mrb[4].mxu1 }
 0x2b4   : > { %v615_v46 = vadd.f32 %v869_v44, %v693_v38  ;;  %v609_v47 = vpop.f32.mrb[5].mxu1  ;;  %623 = vst [vmem:[%s280_s13 + $0x8] sm:$0xff] %v619_v45 }
 0x2b5   : > { %622 = vst [vmem:[%s280_s13] sm:$0xff] %v618_v43  ;;  %v610_v48 = vadd.f32 %v693_v38, %v609_v47 }
 0x2b6   : > { %v621_v50 = vmax.f32 %v615_v46, 0.0 }
 0x2b7   : > { %v620_v49 = vmax.f32 %v610_v48, 0.0 }
 0x2b8   : > { %625 = vst [vmem:[%s280_s13 + $0x18] sm:$0xff] %v621_v50 }
 0x2b9   : > { %624 = vst [vmem:[%s280_s13 + $0x10] sm:$0xff] %v620_v49 }
 0x2ba PF: > { %s17_s24 = sadd.s32 1, %s996_s24  }
 0x2bb   : > { %p14_p4 = scmp.ge.s32.totalorder %s17_s24, 4  }
 0x2bd   :  { %16 = sbr.rel (!%p14_p4) target bundleno = 1 (0x1), region = 78 }

</bundles_post_ra>
